<compile_context>
chip_gen: v6e
topology: v6e:2x2x1
jax: 0.10.0
libtpu: 0.0.40
codegen_flags: <defaults>
</compile_context>

<pallas_src>
import jax
import jax.numpy as jnp
from jax.experimental import pallas as pl
from jax.experimental.pallas import tpu as pltpu


def _copy_kernel(x_ref, o_ref):
    # Identity copy of one (tm, C) lane-dense tile resident in VMEM.
    o_ref[...] = x_ref[...]


_LANE = 128                       # vreg lane width
_MAX_LANE_WIDTH = 8192            # cap on the flattened last-dim width
_TARGET_TILE_BYTES = 2 * 1024 * 1024  # ~2 MiB/tile; in+out double-buffered ~8 MiB VMEM


def _pick_lane_width(total: int) -> tuple[int, int]:
    """Return (lane_width C, padded_total). C is a multiple of 128; padded_total
    is the smallest multiple of C that is >= total (== total when divisible)."""
    c = _MAX_LANE_WIDTH
    while c > _LANE and total % c != 0:
        c //= 2
    if total % c == 0:
        return c, total
    # total is not a multiple of 128: pad the flattened length up to the next
    # multiple of a modest lane width (waste < C elements, still lane-dense).
    c = _LANE if total < 4 * _LANE else 512
    return c, pl.cdiv(total, c) * c


def _vmem_limit_bytes() -> int:
    """Per-generation VMEM cap: ~half of physical VMEM, clamped to [16, 64] MiB."""
    try:
        cap = int(getattr(pltpu.get_tpu_info(), "vmem_capacity_bytes"))
    except Exception:
        cap = 64 * 1024 * 1024
    return int(min(64 * 1024 * 1024, max(16 * 1024 * 1024, cap // 2)))


def _pallas_identity_copy(x2d: jax.Array) -> jax.Array:
    """Gridded, double-buffered identity copy of a lane-dense (rows, C) slab."""
    rows, cols = x2d.shape
    itemsize = jnp.dtype(x2d.dtype).itemsize

    # ~2 MiB per tile; keep the row-block a multiple of 8 (sublane tiling)
    # unless it covers the whole row extent.
    rows_per_tile = max(1, _TARGET_TILE_BYTES // (cols * itemsize))
    if rows_per_tile < rows:
        tm = max(8, (rows_per_tile // 8) * 8)
    else:
        tm = rows
    grid = (pl.cdiv(rows, tm),)

    return pl.pallas_call(
        _copy_kernel,
        out_shape=jax.ShapeDtypeStruct((rows, cols), x2d.dtype),
        grid=grid,
        in_specs=[pl.BlockSpec((tm, cols), lambda i: (i, 0))],
        out_specs=pl.BlockSpec((tm, cols), lambda i: (i, 0)),
        cost_estimate=pl.CostEstimate(
            flops=0,
            transcendentals=0,
            bytes_accessed=2 * rows * cols * itemsize,
        ),
        compiler_params=pltpu.CompilerParams(
            dimension_semantics=("parallel",),
            vmem_limit_bytes=_vmem_limit_bytes(),
        ),
    )(x2d)


def unsqueeze_layer(x: jax.Array, dim: int, *, materialize: bool = False) -> jax.Array:
    """JAX equivalent of torch.Tensor.unsqueeze(dim).

    Default path is metadata-only (free and optimal).  Set materialize=True to
    force the data through the Pallas identity-copy kernel, producing an
    independent output buffer.
    """
    ndim = x.ndim
    # torch semantics: dim may be in [-(ndim+1), ndim]
    if dim < 0:
        dim = dim + ndim + 1
    assert 0 <= dim <= ndim, "unsqueeze dim out of range"
    out_shape = x.shape[:dim] + (1,) + x.shape[dim:]

    if not materialize or x.size == 0:
        # Fast path: pure metadata, zero HBM traffic.
        return jnp.expand_dims(x, dim)

    total = x.size
    cols, padded = _pick_lane_width(total)

    flat = x.reshape(total)
    if padded != total:
        # Keep the copy lane-dense and unmasked for all element counts.
        flat = jnp.pad(flat, (0, padded - total))

    y2d = _pallas_identity_copy(flat.reshape(padded // cols, cols))

    y = y2d.reshape(padded)
    if padded != total:
        y = y[:total]
    return y.reshape(out_shape)


if __name__ == "__main__":
    key = jax.random.PRNGKey(0)
    x = jax.random.normal(key, (2, 4, 16, 16), dtype=jnp.float32)

    dim = 1  # UnsqueezeLayer(dim=1)
    expected = jnp.expand_dims(x, dim)

    # Module forward (metadata-only fast path).
    y = unsqueeze_layer(x, dim)
    # Exercise the Pallas copy kernel (materializing path, wide lane-dense slab).
    y_mat = unsqueeze_layer(x, dim, materialize=True)
    # Exercise the padding path (element count not a multiple of 128) and a
    # negative dim, matching torch.unsqueeze semantics.
    x_odd = jax.random.normal(jax.random.PRNGKey(1), (3, 5, 7), dtype=jnp.float32)
    y_odd = unsqueeze_layer(x_odd, -1, materialize=True)

    jax.block_until_ready((y, y_mat, y_odd))

    # Correctness checks against the reference semantics.
    assert y.shape == (2, 1, 4, 16, 16), y.shape
    assert y.dtype == x.dtype
    assert bool(jnp.array_equal(y, expected))

    assert y_mat.shape == (2, 1, 4, 16, 16), y_mat.shape
    assert y_mat.dtype == x.dtype
    assert bool(jnp.array_equal(y_mat, expected))

    assert y_odd.shape == (3, 5, 7, 1), y_odd.shape
    assert bool(jnp.array_equal(y_odd, jnp.expand_dims(x_odd, -1)))

    print("KERNEL_OK")
</pallas_src>

<mosaic_0001>
module attributes {stable_mosaic.version = 11 : i64} {
  func.func @_copy_kernel(%arg0: i32, %arg1: memref<1x2048xf32, #tpu.memory_space<vmem>>, %arg2: memref<1x2048xf32, #tpu.memory_space<vmem>>) attributes {dimension_semantics = [#tpu.dimension_semantics<parallel>], iteration_bounds = array<i64: 1>, scalar_prefetch = 0 : i64, scratch_operands = 0 : i64, tpu.core_type = #tpu.core_type<tc>, window_params = [{transform_indices = @transform_0, window_bounds = array<i64: 1, 2048>}, {transform_indices = @transform_1, window_bounds = array<i64: 1, 2048>}]} {
    %c0 = arith.constant 0 : index
    %c0_0 = arith.constant 0 : index
    %0 = vector.load %arg1[%c0, %c0_0] : memref<1x2048xf32, #tpu.memory_space<vmem>>, vector<1x2048xf32>
    %c0_1 = arith.constant 0 : index
    %c0_2 = arith.constant 0 : index
    %1 = vector.load %arg2[%c0_1, %c0_2] : memref<1x2048xf32, #tpu.memory_space<vmem>>, vector<1x2048xf32>
    tpu.vector_store %arg2[%c0_1, %c0_2], %0 {strides = array<i32>} : memref<1x2048xf32, #tpu.memory_space<vmem>>, vector<1x2048xf32>,
    return
  }
  func.func @transform_0(%arg0: i32) -> (i32, i32) {
    %c0_i32 = arith.constant 0 : i32
    %c0_i32_0 = arith.constant 0 : i32
    return %arg0, %c0_i32 : i32, i32
  }
  func.func @transform_1(%arg0: i32) -> (i32, i32) {
    %c0_i32 = arith.constant 0 : i32
    %c0_i32_0 = arith.constant 0 : i32
    return %arg0, %c0_i32 : i32, i32
  }
}

</mosaic_0001>

<bundles_post_ra>
// kernel: tpu_custom_call.1
= control target key start
LH: loop header
LB: loop body
LE: loop exit
PB: predicated region body
PF: predicated region fallthrough
CT: control target
= control target key end

     0   :  { %6 = vsyncpa [#allocation3], 0  ;;  %s104_s0 = inlined_call_operand.hbm [shape: f32[1,2048], index: 0, kind: input, shape index: {}]   ;;  %s105_s1 = inlined_call_operand.hbm [shape: f32[1,2048], index: 1, kind: output, shape index: {}]  }
   0x1   :  { %7 = vsyncpa [#allocation4], 0  ;;  %s86_s6 = smov [#allocation2]  }
   0x2   :  { %s14_s7 = sshll.u32 %s86_s6, 4  ;;  %s15_s7 = int_to_ptr.vmem [resolvable:$true] %s14_s7 }
   0x3   :  { %s50_s8 = scalar_lea.vmem %s15_s7, 256  ;;  %p55_p1 = scmp.lt.s32.totalorder %s15_s7, %s15_s7 }
   0x4   :  { %p51_p0 = scmp.ne.s32.totalorder %s15_s7, %s50_s8  ;;  %p56_p2 = scmp.lt.s32.totalorder %s50_s8, %s50_s8 }
   0x6   :  { %p57_p3 = por %p56_p2, %p55_p1 }
   0x8   :  { %p58_p4 = pnand %p57_p3, %p51_p0 }
   0xa   :  { %61 = shalt.err (!%p58_p4)
}
   0xb   :  { %17 = dma.hbm_to_vmem [thread:$0]  %s104_s0, 256, %s15_s7, [#allocation3]  }
   0xc   :  { %82 = dma.done.wait [#allocation3], 256  }
   0xd   :  { %83 = vsyncadd [#allocation3], 4294967040  ;;  %s87_s11 = smov [#allocation5]   ;;  %v21_v0 = vld [vmem:[#allocation2] sm:$0xff]  ;;  %v22_v1 = vld [vmem:[#allocation2 + $0x8] sm:$0xff] }
   0xe   :  { %s31_s12 = sshll.u32 %s87_s11, 4  ;;  %23 = vst [vmem:[#allocation5] sm:$0xff] %v21_v0  ;;  %24 = vst [vmem:[#allocation5 + $0x8] sm:$0xff] %v22_v1  ;;  %s32_s12 = int_to_ptr.vmem [resolvable:$true] %s31_s12 }
   0xf   :  { %s62_s13 = scalar_lea.vmem %s32_s12, 256  ;;  %p67_p6 = scmp.lt.s32.totalorder %s32_s12, %s32_s12 }
  0x10   :  { %p63_p5 = scmp.ne.s32.totalorder %s32_s12, %s62_s13  ;;  %p68_p7 = scmp.lt.s32.totalorder %s62_s13, %s62_s13 }
  0x12   :  { %p69_p8 = por %p68_p7, %p67_p6 }
  0x14   :  { %p70_p9 = pnand %p69_p8, %p63_p5 }
  0x16   :  { %73 = shalt.err (!%p70_p9)
}
  0x17   :  { %34 = dma.vmem_to_hbm [thread:$0]  %s32_s12, 256, %s105_s1, [#allocation4]  }
  0x18   :  { %84 = dma.done.wait [#allocation4], 256  }
  0x19   :  { %85 = vsyncadd [#allocation4], 4294967040 }
  0x1a   :  { %38 = vsyncpa [#allocation3], 1 }
  0x1b   :  { %39 = vsyncpa [#allocation4], 1 }

</bundles_post_ra>
